<compile_context>
chip_gen: v7x
topology: tpu7x:2x2x1
jax: 0.10.0
libtpu: 0.0.40
codegen_flags: <defaults>
</compile_context>

<pallas_src>
import jax
import jax.numpy as jnp
from jax import lax
from jax.experimental import pallas as pl
from jax.experimental.pallas import tpu as pltpu


_LANE = 128      # pad K and N to multiples of this (lane-dense)
_SUBLANE = 8     # pad batch to multiples of this in the grid-less path
_TM = 512        # batch tile for the batch-tiled path (multiple of 8)


def _round_up(x: int, m: int) -> int:
    return ((x + m - 1) // m) * m


def _linear_kernel(x_ref, w_ref, b_ref, o_ref):
    # x_ref: (TM, K_pad)  VMEM
    # w_ref: (N_pad, K_pad) VMEM   (PyTorch layout; contract on K = last dim)
    # b_ref: (1, N_pad)   VMEM
    # o_ref: (TM, N_pad)  VMEM
    acc = lax.dot_general(
        x_ref[...], w_ref[...],
        dimension_numbers=(((1,), (1,)), ((), ())),   # x @ W.T on the MXU
        preferred_element_type=jnp.float32,
    )
    o_ref[...] = (acc + b_ref[...]).astype(o_ref.dtype)


@jax.jit
def logistic_classifier_forward(x, weight, bias):
    """out = x @ weight.T + bias  (forward of PyTorch nn.Linear).

    x: (B, n_input); weight: (n_output, n_input); bias: (n_output,).
    """
    B, K = x.shape
    N = weight.shape[0]

    K_pad = _round_up(K, _LANE)
    N_pad = _round_up(N, _LANE)

    # Lane-dense zero padding (fused by XLA under jit). No transpose of W.
    w_pad = jnp.pad(weight, ((0, N_pad - N), (0, K_pad - K)))
    b_pad = jnp.pad(bias, (0, N_pad - N)).reshape(1, N_pad)

    if B <= _TM:
        # ---- small-batch path: single kernel invocation, no grid ----
        B_pad = _round_up(B, _SUBLANE)
        x_pad = jnp.pad(x, ((0, B_pad - B), (0, K_pad - K)))
        out = pl.pallas_call(
            _linear_kernel,
            out_shape=jax.ShapeDtypeStruct((B_pad, N_pad), x.dtype),
            in_specs=[
                pl.BlockSpec(memory_space=pltpu.MemorySpace.VMEM),
                pl.BlockSpec(memory_space=pltpu.MemorySpace.VMEM),
                pl.BlockSpec(memory_space=pltpu.MemorySpace.VMEM),
            ],
            out_specs=pl.BlockSpec(memory_space=pltpu.MemorySpace.VMEM),
        )(x_pad, w_pad, b_pad)
    else:
        # ---- large-batch path: tile only the batch dim, W/b stay resident ----
        B_pad = _round_up(B, _TM)
        x_pad = jnp.pad(x, ((0, B_pad - B), (0, K_pad - K)))
        out = pl.pallas_call(
            _linear_kernel,
            out_shape=jax.ShapeDtypeStruct((B_pad, N_pad), x.dtype),
            grid=(B_pad // _TM,),
            in_specs=[
                pl.BlockSpec((_TM, K_pad), lambda i: (i, 0)),
                pl.BlockSpec((N_pad, K_pad), lambda i: (0, 0)),  # resident
                pl.BlockSpec((1, N_pad), lambda i: (0, 0)),      # resident
            ],
            out_specs=pl.BlockSpec((_TM, N_pad), lambda i: (i, 0)),
            compiler_params=pltpu.CompilerParams(
                dimension_semantics=("parallel",)),   # v7x: shard across 2 TCs
        )(x_pad, w_pad, b_pad)

    return out[:B, :N]


if __name__ == "__main__":
    # Small shapes consistent with the module: batch=8, n_input=32, n_output=16
    B, n_input, n_output = 8, 32, 16

    key = jax.random.PRNGKey(0)
    kx, kw, kb = jax.random.split(key, 3)

    # Deterministic parameter init mimicking PyTorch nn.Linear default
    # (uniform in [-1/sqrt(n_input), 1/sqrt(n_input)]).
    bound = 1.0 / (n_input ** 0.5)
    x = jax.random.normal(kx, (B, n_input), dtype=jnp.float32)
    weight = jax.random.uniform(kw, (n_output, n_input), dtype=jnp.float32,
                                minval=-bound, maxval=bound)
    bias = jax.random.uniform(kb, (n_output,), dtype=jnp.float32,
                              minval=-bound, maxval=bound)

    # Small-batch (grid-less) path.
    out = jax.block_until_ready(logistic_classifier_forward(x, weight, bias))
    ref = x @ weight.T + bias
    assert out.shape == (B, n_output)
    assert jnp.allclose(out, ref, atol=1e-5, rtol=1e-5)

    # Also exercise the batch-tiled path once (2 grid steps, still tiny).
    Bl = 1024
    xl = jax.random.normal(jax.random.PRNGKey(1), (Bl, n_input),
                           dtype=jnp.float32)
    outl = jax.block_until_ready(logistic_classifier_forward(xl, weight, bias))
    refl = xl @ weight.T + bias
    assert outl.shape == (Bl, n_output)
    assert jnp.allclose(outl, refl, atol=1e-4, rtol=1e-4)

    print("KERNEL_OK")
</pallas_src>

<mosaic_0001>
module attributes {stable_mosaic.version = 11 : i64} {
  func.func @_linear_kernel(%arg0: memref<8x128xf32, #tpu.memory_space<vmem>>, %arg1: memref<128x128xf32, #tpu.memory_space<vmem>>, %arg2: memref<1x128xf32, #tpu.memory_space<vmem>>, %arg3: memref<8x128xf32, #tpu.memory_space<vmem>>) attributes {dimension_semantics = [], scalar_prefetch = 0 : i64, scratch_operands = 0 : i64, tpu.core_type = #tpu.core_type<tc>} {
    %c0 = arith.constant 0 : index
    %c0_0 = arith.constant 0 : index
    %0 = vector.load %arg0[%c0, %c0_0] : memref<8x128xf32, #tpu.memory_space<vmem>>, vector<8x128xf32>
    %c0_1 = arith.constant 0 : index
    %c0_2 = arith.constant 0 : index
    %1 = vector.load %arg1[%c0_1, %c0_2] : memref<128x128xf32, #tpu.memory_space<vmem>>, vector<128x128xf32>
    %cst = arith.constant dense<0.000000e+00> : vector<8x128xf32>
    %2 = tpu.matmul %0, %1, %cst {dimension_numbers = #tpu.dot_dimension_numbers<[1], [1], [0], [0], [0, 0, 1, 0], [], []>} : vector<8x128xf32>, vector<128x128xf32>, vector<8x128xf32> -> vector<8x128xf32>
    %c0_3 = arith.constant 0 : index
    %c0_4 = arith.constant 0 : index
    %3 = vector.load %arg2[%c0_3, %c0_4] : memref<1x128xf32, #tpu.memory_space<vmem>>, vector<1x128xf32>
    %4 = vector.broadcast %3 : vector<1x128xf32> to vector<8x128xf32>
    %5 = arith.addf %2, %4 : vector<8x128xf32>
    %c0_5 = arith.constant 0 : index
    %c0_6 = arith.constant 0 : index
    %6 = vector.load %arg3[%c0_5, %c0_6] : memref<8x128xf32, #tpu.memory_space<vmem>>, vector<8x128xf32>
    tpu.vector_store %arg3[%c0_5, %c0_6], %5 {strides = array<i32>} : memref<8x128xf32, #tpu.memory_space<vmem>>, vector<8x128xf32>,
    return
  }
}

</mosaic_0001>

<bundles_post_ra>
// kernel: logistic_classifier_forward.1
= control target key start
LH: loop header
LB: loop body
LE: loop exit
PB: predicated region body
PF: predicated region fallthrough
CT: control target
= control target key end

     0   :  { %v229_v2 = vmov 0.0|0.0   ;;  %vm230_vm0 = vmmov 0   ;;  %v231_v4 = vmov 0.0   ;;  %s319_s0 = inlined_call_operand.vmem [shape: f32[8,128], index: 0, kind: input, shape index: {}]   ;;  %s320_s1 = inlined_call_operand.vmem [shape: f32[128,128], index: 1, kind: input, shape index: {}]   ;;  %s321_s2 = inlined_call_operand.vmem [shape: f32[1,128], index: 2, kind: input, shape index: {}]   ;;  %s322_s3 = inlined_call_operand.hbm [shape: f32[8,128], index: 3, kind: output, shape index: {}]  }
   0x1   :  { %v16_v0 = vld [vmem:[%s320_s1] sm:$0xff]  ;;  %v17_v1 = vld [vmem:[%s320_s1 + $0x8] sm:$0xff]  ;;  %177 = vmatprep.subr.bf16.mxu0 %v229_v2  ;;  %174 = vmatprep.mubr.msk.f32.mxu0 %vm230_vm0, %v231_v4  ;;  %v18_v5 = vld [vmem:[%s320_s1 + $0x10] sm:$0xff] }
   0x2   :  { %v178_v3 = vpack.c.bf16 %v17_v1, %v16_v0  ;;  %v19_v6 = vld [vmem:[%s320_s1 + $0x18] sm:$0xff] }
   0x4   :  { %179 = vmatpush3.bf16.xpose.msra.mxu0 %v178_v3 }
   0x5   :  { %180 = vmatprep.subr.bf16.mxu0 %v229_v2 }
   0x6   :  { %8 = vsyncpa [#allocation3], 0  ;;  %v181_v7 = vpack.c.bf16 %v19_v6, %v18_v5  ;;  %v20_v8 = vld [vmem:[%s320_s1 + $0x20] sm:$0xff]  ;;  %v21_v9 = vld [vmem:[%s320_s1 + $0x28] sm:$0xff]  ;;  %s232_s21 = smov [#allocation2]  }
   0x7   :  { %v184_v10 = vpack.c.bf16 %v21_v9, %v20_v8  ;;  %v22_v11 = vld [vmem:[%s320_s1 + $0x30] sm:$0xff]  ;;  %v23_v12 = vld [vmem:[%s320_s1 + $0x38] sm:$0xff]  ;;  %v24_v14 = vld [vmem:[%s320_s1 + $0x40] sm:$0xff]  ;;  %s116_s22 = sshll.u32 %s232_s21, 4  ;;  %s117_s22 = int_to_ptr.vmem [resolvable:$true] %s116_s22 }
   0x8   :  { %v187_v13 = vpack.c.bf16 %v23_v12, %v22_v11  ;;  %v25_v15 = vld [vmem:[%s320_s1 + $0x48] sm:$0xff]  ;;  %v26_v17 = vld [vmem:[%s320_s1 + $0x50] sm:$0xff]  ;;  %v27_v18 = vld [vmem:[%s320_s1 + $0x58] sm:$0xff]  ;;  %s205_s23 = scalar_lea.vmem %s117_s22, 128  ;;  %p210_p1 = scmp.lt.s32.totalorder %s117_s22, %s117_s22 }
   0x9   :  { %v190_v16 = vpack.c.bf16 %v25_v15, %v24_v14  ;;  %v193_v19 = vpack.c.bf16 %v27_v18, %v26_v17  ;;  %v28_v20 = vld [vmem:[%s320_s1 + $0x60] sm:$0xff]  ;;  %v29_v21 = vld [vmem:[%s320_s1 + $0x68] sm:$0xff]  ;;  %v30_v23 = vld [vmem:[%s320_s1 + $0x70] sm:$0xff]  ;;  %p206_p0 = scmp.ne.s32.totalorder %s117_s22, %s205_s23  ;;  %p211_p2 = scmp.lt.s32.totalorder %s205_s23, %s205_s23 }
   0xa   :  { %v196_v22 = vpack.c.bf16 %v29_v21, %v28_v20  ;;  %v31_v24 = vld [vmem:[%s320_s1 + $0x78] sm:$0xff]  ;;  %v15_v26 = vld [vmem:[%s319_s0] sm:$0xff] }
   0xb   :  { %v199_v25 = vpack.c.bf16 %v31_v24, %v30_v23  ;;  %v124_v27 = vld [vmem:[%s321_s2] ss:$0 sm:$0xff]  ;;  %p212_p3 = por %p211_p2, %p210_p1 }
   0xc   :  { %182 = vmatpush3.bf16.xpose.msra.mxu0 %v181_v7 }
   0xd   :  { %183 = vmatprep.subr.bf16.mxu0 %v229_v2  ;;  %p213_p4 = pnand %p212_p3, %p206_p0 }
  0x14   :  { %185 = vmatpush3.bf16.xpose.msra.mxu0 %v184_v10 }
  0x15   :  { %186 = vmatprep.subr.bf16.mxu0 %v229_v2 }
  0x1c   :  { %188 = vmatpush3.bf16.xpose.msra.mxu0 %v187_v13 }
  0x1d   :  { %189 = vmatprep.subr.bf16.mxu0 %v229_v2 }
  0x24   :  { %191 = vmatpush3.bf16.xpose.msra.mxu0 %v190_v16 }
  0x25   :  { %192 = vmatprep.subr.bf16.mxu0 %v229_v2 }
  0x2c   :  { %194 = vmatpush3.bf16.xpose.msra.mxu0 %v193_v19 }
  0x2d   :  { %195 = vmatprep.subr.bf16.mxu0 %v229_v2 }
  0x34   :  { %197 = vmatpush3.bf16.xpose.msra.mxu0 %v196_v22 }
  0x35   :  { %198 = vmatprep.subr.bf16.mxu0 %v229_v2 }
  0x3c   :  { %200 = vmatpush3.bf16.xpose.msra.mxu0 %v199_v25 }
  0x43   :  { %175 = vmatmul.mubr.f32.vlgmr.msra.gmra.mrb[0].mxu0 %v15_v26 }
 0x116   :  { %v105_v28 = vpop.f32.mrb[0].mxu0 }
 0x117   :  { %v106_v29 = vadd.f32 %v124_v27, %v105_v28  ;;  %v176_v30 = vpop.f32.mrb[1].mxu0 }
 0x119   :  { %109 = vst [vmem:[#allocation2] sm:$0xff] %v106_v29 }
 0x11a   :  { %216 = shalt.err (!%p213_p4)
}
 0x11b   :  { %s217_s24 = scalar_lea.hbm %s322_s3, 128 }
 0x11c   :  { %p218_p5 = scmp.ne.s32.totalorder %s322_s3, %s217_s24  ;;  %p221_p6 = scmp.lt.u32.totalorder %s217_s24, %s322_s3 }
 0x11e   :  { %p223_p7 = pnand %p221_p6, %p218_p5 }
 0x120   :  { %226 = shalt.err (!%p223_p7)
}
 0x121   :  { %119 = dma.vmem_to_hbm [thread:$0]  %s117_s22, 128, %s322_s3, [#allocation3]  }
 0x122   :  { %227 = dma.done.wait [#allocation3], 128  }
 0x123   :  { %228 = vsyncadd [#allocation3], 4294967168 }
 0x124   :  { %123 = vsyncpa [#allocation3], 1 }

</bundles_post_ra>
